<compile_context>
chip_gen: v7x
topology: tpu7x:2x2x1
jax: 0.10.0
libtpu: 0.0.40
codegen_flags: <defaults>
</compile_context>

<pallas_src>
import jax
import jax.numpy as jnp
from jax.experimental import pallas as pl
from jax.experimental.pallas import tpu as pltpu


def _round_up(n, m):
    return ((n + m - 1) // m) * m


# ----------------------------------------------------------------------------
# Kernel
# ----------------------------------------------------------------------------
def _mlp_kernel(xy_ref,
                w0, b0, w2, b2, wc1a, wc1b, bc1,
                wc2, bc2, wc3, bc3, wc4, bc4,
                o_ref):
    """Whole fused MLP chain for one (block_b, innershape+4) batch tile.

    Weight refs are (in, out); bias refs are (1, out) float32.
    Matmul inputs are cast to the weight dtype (bf16 by default); accumulation
    is f32 (preferred_element_type); bias add + ReLU run in f32.
    """
    f32 = jnp.float32

    def dense(h, w_ref, b_ref, relu=True):
        w = w_ref[...]
        z = jnp.dot(h.astype(w.dtype), w, preferred_element_type=f32) + b_ref[...]
        return jnp.maximum(z, 0.0) if relu else z

    # Fused [Dense1(x) | inputDense1(y)] -> ReLU : one block-diagonal matmul.
    h0 = dense(xy_ref[...], w0, b0)                       # (blk, 96)

    # Dense2 -> ReLU  (w2 has zero rows for the inputDense1 lanes of h0).
    out = dense(h0, w2, b2)                               # (blk, 128)

    # cat([out, alterout]) @ Wc1 + bc1 -> ReLU, as a split matmul:
    #   out @ wc1[:128]  +  h0 @ (zero-padded wc1[128:160])
    wa = wc1a[...]
    wb = wc1b[...]
    c = (jnp.dot(out.astype(wa.dtype), wa, preferred_element_type=f32)
         + jnp.dot(h0.astype(wb.dtype), wb, preferred_element_type=f32)
         + bc1[...])
    c = jnp.maximum(c, 0.0)                               # (blk, 128)

    c = dense(c, wc2, bc2)                                # catDense2 -> ReLU (blk, 64)
    c = dense(c, wc3, bc3)                                # catDense3 -> ReLU (blk, 32)
    # catDense4 (no activation); output is lane-padded to a multiple of 128.
    o_ref[...] = dense(c, wc4, bc4, relu=False).astype(o_ref.dtype)


# ----------------------------------------------------------------------------
# Parameter preparation (fusion / padding / dtype cast) -- exact transforms
# ----------------------------------------------------------------------------
def prepare_params(params, innershape, outshape, *, compute_dtype=jnp.bfloat16):
    """Build the fused/padded weight set the kernel consumes (all exact)."""
    f32 = jnp.float32
    out_pad = _round_up(max(outshape, 128), 128)

    w1, b1 = params["w1"], params["b1"]        # (innershape, 64), (1, 64)
    w2, b2 = params["w2"], params["b2"]        # (64, 128),        (1, 128)
    wi, bi = params["wi"], params["bi"]        # (4, 32),          (1, 32)
    wc1, bc1 = params["wc1"], params["bc1"]    # (160, 128),       (1, 128)
    wc2, bc2 = params["wc2"], params["bc2"]    # (128, 64),        (1, 64)
    wc3, bc3 = params["wc3"], params["bc3"]    # (64, 32),         (1, 32)
    wc4, bc4 = params["wc4"], params["bc4"]    # (32, outshape),   (1, outshape)

    # Fused first layer: block-diagonal (innershape+4, 96) -> [Dense1 | inputDense1].
    w0 = jnp.zeros((innershape + 4, 96), f32)
    w0 = w0.at[:innershape, :64].set(w1)
    w0 = w0.at[innershape:, 64:].set(wi)
    b0 = jnp.concatenate([b1, bi], axis=1)                         # (1, 96)

    # Dense2 consumes only lanes 0:64 of h0 -> zero-row padded weight.
    w2p = jnp.zeros((96, 128), f32).at[:64, :].set(w2)

    # catDense1 split: `out` part + `alterout` part embedded at h0 lanes 64:96.
    wc1a = wc1[:128]                                               # (128, 128)
    wc1b = jnp.zeros((96, 128), f32).at[64:, :].set(wc1[128:])     # (96, 128)

    # catDense4 padded to lane-dense output width (extra columns are zero).
    wc4p = jnp.zeros((32, out_pad), f32).at[:, :outshape].set(wc4)
    bc4p = jnp.zeros((1, out_pad), f32).at[:, :outshape].set(bc4)

    cdt = compute_dtype
    prepped = dict(
        w0=w0.astype(cdt), b0=b0,
        w2=w2p.astype(cdt), b2=b2,
        wc1a=wc1a.astype(cdt), wc1b=wc1b.astype(cdt), bc1=bc1,
        wc2=wc2.astype(cdt), bc2=bc2,
        wc3=wc3.astype(cdt), bc3=bc3,
        wc4=wc4p.astype(cdt), bc4=bc4p,
    )
    return prepped, out_pad


# ----------------------------------------------------------------------------
# Wrapper
# ----------------------------------------------------------------------------
def yolo_feature_processor_pallas(x, y, params, *, block_b=1024,
                                  compute_dtype=jnp.bfloat16):
    """x: (B, innershape) f32, y: (B, 4) f32, params: raw (in, out) weights."""
    B, innershape = x.shape
    assert y.shape == (B, 4)
    outshape = params["wc4"].shape[1]

    prepped, out_pad = prepare_params(params, innershape, outshape,
                                      compute_dtype=compute_dtype)

    # Batch tile: multiple of 8, bounded so the 1-D grid actually pipelines and
    # the per-step VMEM footprint stays small (safe on v7x's 64 MiB VMEM).
    block_b = min(int(block_b), _round_up(B, 8))
    block_b = max(8, _round_up(block_b, 8))
    b_pad = _round_up(B, block_b)
    n_blocks = b_pad // block_b

    # Fused [x | y] input in the matmul dtype; zero-pad the batch tail so padded
    # rows compute on zeros (their outputs are sliced away below).
    k_in = innershape + 4
    xy = jnp.concatenate([x, y], axis=1).astype(compute_dtype)
    if b_pad != B:
        xy = jnp.pad(xy, ((0, b_pad - B), (0, 0)))

    weight_order = ["w0", "b0", "w2", "b2", "wc1a", "wc1b", "bc1",
                    "wc2", "bc2", "wc3", "bc3", "wc4", "bc4"]
    weight_args = [prepped[k] for k in weight_order]

    def _full(shape):
        return pl.BlockSpec(shape, lambda i: (0,) * len(shape))

    in_specs = ([pl.BlockSpec((block_b, k_in), lambda i: (i, 0))]
                + [_full(w.shape) for w in weight_args])
    out_spec = pl.BlockSpec((block_b, out_pad), lambda i: (i, 0))

    flops = 2 * b_pad * (k_in * 96 + 96 * 128 + 128 * 128 + 96 * 128
                         + 128 * 64 + 64 * 32 + 32 * out_pad)
    bytes_accessed = (int(xy.size) * xy.dtype.itemsize
                      + b_pad * out_pad * 4
                      + sum(int(w.size) * w.dtype.itemsize for w in weight_args))

    out_padded = pl.pallas_call(
        _mlp_kernel,
        out_shape=jax.ShapeDtypeStruct((b_pad, out_pad), jnp.float32),
        grid=(n_blocks,),
        in_specs=in_specs,
        out_specs=out_spec,
        compiler_params=pltpu.CompilerParams(
            dimension_semantics=("parallel",)),
        cost_estimate=pl.CostEstimate(flops=flops, transcendentals=0,
                                      bytes_accessed=bytes_accessed),
    )(xy, *weight_args)

    return out_padded[:B, :outshape]


# ----------------------------------------------------------------------------
# Init + references
# ----------------------------------------------------------------------------
def init_params(key, innershape, outshape):
    """Deterministic synthetic init. Weights stored as (in, out) = torch W.T."""
    def linear(k, fan_in, fan_out):
        kw, kb = jax.random.split(k)
        bound = 1.0 / jnp.sqrt(float(fan_in))
        w = jax.random.uniform(kw, (fan_in, fan_out), jnp.float32, -bound, bound)
        b = jax.random.uniform(kb, (1, fan_out), jnp.float32, -bound, bound)
        return w, b

    keys = jax.random.split(key, 7)
    w1, b1 = linear(keys[0], innershape, 64)     # Dense1
    w2, b2 = linear(keys[1], 64, 128)            # Dense2
    wi, bi = linear(keys[2], 4, 32)              # inputDense1
    wc1, bc1 = linear(keys[3], 160, 128)         # catDense1
    wc2, bc2 = linear(keys[4], 128, 64)          # catDense2
    wc3, bc3 = linear(keys[5], 64, 32)           # catDense3
    wc4, bc4 = linear(keys[6], 32, outshape)     # catDense4
    return dict(w1=w1, b1=b1, w2=w2, b2=b2, wi=wi, bi=bi,
                wc1=wc1, bc1=bc1, wc2=wc2, bc2=bc2,
                wc3=wc3, bc3=bc3, wc4=wc4, bc4=bc4)


def reference_f32(x, y, p):
    """Pure-JAX f32 reference matching the PyTorch forward exactly."""
    relu = lambda t: jnp.maximum(t, 0.0)
    out = relu(x @ p["w1"] + p["b1"])
    out = relu(out @ p["w2"] + p["b2"])
    alt = relu(y @ p["wi"] + p["bi"])
    cat = jnp.concatenate([out, alt], axis=1)
    c = relu(cat @ p["wc1"] + p["bc1"])
    c = relu(c @ p["wc2"] + p["bc2"])
    c = relu(c @ p["wc3"] + p["bc3"])
    return c @ p["wc4"] + p["bc4"]


def reference_prepared(x, y, params, *, compute_dtype=jnp.bfloat16):
    """Pure-JAX reference doing the SAME fused/padded/bf16 math as the kernel."""
    B, innershape = x.shape
    outshape = params["wc4"].shape[1]
    p, _ = prepare_params(params, innershape, outshape,
                          compute_dtype=compute_dtype)
    f32 = jnp.float32
    relu = lambda t: jnp.maximum(t, 0.0)
    dot = lambda a, w: jnp.dot(a.astype(w.dtype), w, preferred_element_type=f32)
    xy = jnp.concatenate([x, y], axis=1)
    h0 = relu(dot(xy, p["w0"]) + p["b0"])
    out = relu(dot(h0, p["w2"]) + p["b2"])
    c = relu(dot(out, p["wc1a"]) + dot(h0, p["wc1b"]) + p["bc1"])
    c = relu(dot(c, p["wc2"]) + p["bc2"])
    c = relu(dot(c, p["wc3"]) + p["bc3"])
    o = dot(c, p["wc4"]) + p["bc4"]
    return o[:, :outshape]


if __name__ == "__main__":
    key = jax.random.PRNGKey(0)
    k_x, k_y, k_p = jax.random.split(key, 3)

    B, innershape, outshape = 8, 16, 8
    x = jax.random.normal(k_x, (B, innershape), jnp.float32)
    y = jax.random.normal(k_y, (B, 4), jnp.float32)
    params = init_params(k_p, innershape, outshape)

    # Small run (block_b clamps to 8, single grid step).
    out = yolo_feature_processor_pallas(x, y, params)
    out = jax.block_until_ready(out)
    assert out.shape == (B, outshape)
    assert bool(jnp.all(jnp.isfinite(out)))

    # Tight check vs a pure-JAX reference using identical fused weights / casts.
    ref_matched = reference_prepared(x, y, params)
    assert jnp.allclose(out, ref_matched, atol=2e-3, rtol=2e-3), \
        "mismatch vs matched-precision reference"

    # Loose check vs the exact f32 PyTorch-equivalent reference (bf16 matmul inputs).
    ref32 = reference_f32(x, y, params)
    assert jnp.allclose(out, ref32, atol=5e-2, rtol=5e-2), "mismatch vs f32 reference"

    # Multi-block run exercising batch tiling + tail padding (B=40, block_b=16 -> grid=3).
    B2 = 40
    x2 = jax.random.normal(jax.random.PRNGKey(1), (B2, innershape), jnp.float32)
    y2 = jax.random.normal(jax.random.PRNGKey(2), (B2, 4), jnp.float32)
    out2 = jax.block_until_ready(
        yolo_feature_processor_pallas(x2, y2, params, block_b=16))
    ref2 = reference_prepared(x2, y2, params)
    assert out2.shape == (B2, outshape)
    assert jnp.allclose(out2, ref2, atol=2e-3, rtol=2e-3), "mismatch on tiled run"

    print("KERNEL_OK")
</pallas_src>

<mosaic_0001>
module attributes {stable_mosaic.version = 11 : i64} {
  func.func @_mlp_kernel(%arg0: i32, %arg1: memref<8x20xbf16, #tpu.memory_space<vmem>>, %arg2: memref<20x96xbf16, #tpu.memory_space<vmem>>, %arg3: memref<1x96xf32, #tpu.memory_space<vmem>>, %arg4: memref<96x128xbf16, #tpu.memory_space<vmem>>, %arg5: memref<1x128xf32, #tpu.memory_space<vmem>>, %arg6: memref<128x128xbf16, #tpu.memory_space<vmem>>, %arg7: memref<96x128xbf16, #tpu.memory_space<vmem>>, %arg8: memref<1x128xf32, #tpu.memory_space<vmem>>, %arg9: memref<128x64xbf16, #tpu.memory_space<vmem>>, %arg10: memref<1x64xf32, #tpu.memory_space<vmem>>, %arg11: memref<64x32xbf16, #tpu.memory_space<vmem>>, %arg12: memref<1x32xf32, #tpu.memory_space<vmem>>, %arg13: memref<32x128xbf16, #tpu.memory_space<vmem>>, %arg14: memref<1x128xf32, #tpu.memory_space<vmem>>, %arg15: memref<8x128xf32, #tpu.memory_space<vmem>>) attributes {dimension_semantics = [#tpu.dimension_semantics<parallel>], iteration_bounds = array<i64: 1>, scalar_prefetch = 0 : i64, scratch_operands = 0 : i64, tpu.core_type = #tpu.core_type<tc>, window_params = [{transform_indices = @transform_0, window_bounds = array<i64: 8, 20>}, {pipeline_mode = #tpu.pipeline_mode<synchronous>, transform_indices = @transform_1, window_bounds = array<i64: 20, 96>}, {pipeline_mode = #tpu.pipeline_mode<synchronous>, transform_indices = @transform_2, window_bounds = array<i64: 1, 96>}, {pipeline_mode = #tpu.pipeline_mode<synchronous>, transform_indices = @transform_3, window_bounds = array<i64: 96, 128>}, {pipeline_mode = #tpu.pipeline_mode<synchronous>, transform_indices = @transform_4, window_bounds = array<i64: 1, 128>}, {pipeline_mode = #tpu.pipeline_mode<synchronous>, transform_indices = @transform_5, window_bounds = array<i64: 128, 128>}, {pipeline_mode = #tpu.pipeline_mode<synchronous>, transform_indices = @transform_6, window_bounds = array<i64: 96, 128>}, {pipeline_mode = #tpu.pipeline_mode<synchronous>, transform_indices = @transform_7, window_bounds = array<i64: 1, 128>}, {pipeline_mode = #tpu.pipeline_mode<synchronous>, transform_indices = @transform_8, window_bounds = array<i64: 128, 64>}, {pipeline_mode = #tpu.pipeline_mode<synchronous>, transform_indices = @transform_9, window_bounds = array<i64: 1, 64>}, {pipeline_mode = #tpu.pipeline_mode<synchronous>, transform_indices = @transform_10, window_bounds = array<i64: 64, 32>}, {pipeline_mode = #tpu.pipeline_mode<synchronous>, transform_indices = @transform_11, window_bounds = array<i64: 1, 32>}, {pipeline_mode = #tpu.pipeline_mode<synchronous>, transform_indices = @transform_12, window_bounds = array<i64: 32, 128>}, {pipeline_mode = #tpu.pipeline_mode<synchronous>, transform_indices = @transform_13, window_bounds = array<i64: 1, 128>}, {transform_indices = @transform_14, window_bounds = array<i64: 8, 128>}]} {
    %c0 = arith.constant 0 : index
    %c0_0 = arith.constant 0 : index
    %0 = vector.load %arg1[%c0, %c0_0] : memref<8x20xbf16, #tpu.memory_space<vmem>>, vector<8x20xbf16>
    %c0_1 = arith.constant 0 : index
    %c0_2 = arith.constant 0 : index
    %1 = vector.load %arg2[%c0_1, %c0_2] : memref<20x96xbf16, #tpu.memory_space<vmem>>, vector<20x96xbf16>
    %cst = arith.constant dense<0.000000e+00> : vector<8x96xf32>
    %2 = tpu.matmul %0, %1, %cst {dimension_numbers = #tpu.dot_dimension_numbers<[1], [0], [0], [1], [0, 0, 1, 1], [], []>} : vector<8x20xbf16>, vector<20x96xbf16>, vector<8x96xf32> -> vector<8x96xf32>
    %c0_3 = arith.constant 0 : index
    %c0_4 = arith.constant 0 : index
    %3 = vector.load %arg3[%c0_3, %c0_4] : memref<1x96xf32, #tpu.memory_space<vmem>>, vector<1x96xf32>
    %4 = vector.broadcast %3 : vector<1x96xf32> to vector<8x96xf32>
    %5 = arith.addf %2, %4 : vector<8x96xf32>
    %cst_5 = arith.constant 0.000000e+00 : f32
    %6 = vector.broadcast %cst_5 : f32 to vector<8x96xf32>
    %7 = arith.maximumf %5, %6 : vector<8x96xf32>
    %c0_6 = arith.constant 0 : index
    %c0_7 = arith.constant 0 : index
    %8 = vector.load %arg4[%c0_6, %c0_7] : memref<96x128xbf16, #tpu.memory_space<vmem>>, vector<96x128xbf16>
    %9 = arith.truncf %7 : vector<8x96xf32> to vector<8x96xbf16>
    %cst_8 = arith.constant dense<0.000000e+00> : vector<8x128xf32>
    %10 = tpu.matmul %9, %8, %cst_8 {dimension_numbers = #tpu.dot_dimension_numbers<[1], [0], [0], [1], [0, 0, 1, 1], [], []>} : vector<8x96xbf16>, vector<96x128xbf16>, vector<8x128xf32> -> vector<8x128xf32>
    %c0_9 = arith.constant 0 : index
    %c0_10 = arith.constant 0 : index
    %11 = vector.load %arg5[%c0_9, %c0_10] : memref<1x128xf32, #tpu.memory_space<vmem>>, vector<1x128xf32>
    %12 = vector.broadcast %11 : vector<1x128xf32> to vector<8x128xf32>
    %13 = arith.addf %10, %12 : vector<8x128xf32>
    %cst_11 = arith.constant 0.000000e+00 : f32
    %14 = vector.broadcast %cst_11 : f32 to vector<8x128xf32>
    %15 = arith.maximumf %13, %14 : vector<8x128xf32>
    %c0_12 = arith.constant 0 : index
    %c0_13 = arith.constant 0 : index
    %16 = vector.load %arg6[%c0_12, %c0_13] : memref<128x128xbf16, #tpu.memory_space<vmem>>, vector<128x128xbf16>
    %c0_14 = arith.constant 0 : index
    %c0_15 = arith.constant 0 : index
    %17 = vector.load %arg7[%c0_14, %c0_15] : memref<96x128xbf16, #tpu.memory_space<vmem>>, vector<96x128xbf16>
    %18 = arith.truncf %15 : vector<8x128xf32> to vector<8x128xbf16>
    %cst_16 = arith.constant dense<0.000000e+00> : vector<8x128xf32>
    %19 = tpu.matmul %18, %16, %cst_16 {dimension_numbers = #tpu.dot_dimension_numbers<[1], [0], [0], [1], [0, 0, 1, 1], [], []>} : vector<8x128xbf16>, vector<128x128xbf16>, vector<8x128xf32> -> vector<8x128xf32>
    %20 = arith.truncf %7 : vector<8x96xf32> to vector<8x96xbf16>
    %cst_17 = arith.constant dense<0.000000e+00> : vector<8x128xf32>
    %21 = tpu.matmul %20, %17, %cst_17 {dimension_numbers = #tpu.dot_dimension_numbers<[1], [0], [0], [1], [0, 0, 1, 1], [], []>} : vector<8x96xbf16>, vector<96x128xbf16>, vector<8x128xf32> -> vector<8x128xf32>
    %22 = arith.addf %19, %21 : vector<8x128xf32>
    %c0_18 = arith.constant 0 : index
    %c0_19 = arith.constant 0 : index
    %23 = vector.load %arg8[%c0_18, %c0_19] : memref<1x128xf32, #tpu.memory_space<vmem>>, vector<1x128xf32>
    %24 = vector.broadcast %23 : vector<1x128xf32> to vector<8x128xf32>
    %25 = arith.addf %22, %24 : vector<8x128xf32>
    %cst_20 = arith.constant 0.000000e+00 : f32
    %26 = vector.broadcast %cst_20 : f32 to vector<8x128xf32>
    %27 = arith.maximumf %25, %26 : vector<8x128xf32>
    %c0_21 = arith.constant 0 : index
    %c0_22 = arith.constant 0 : index
    %28 = vector.load %arg9[%c0_21, %c0_22] : memref<128x64xbf16, #tpu.memory_space<vmem>>, vector<128x64xbf16>
    %29 = arith.truncf %27 : vector<8x128xf32> to vector<8x128xbf16>
    %cst_23 = arith.constant dense<0.000000e+00> : vector<8x64xf32>
    %30 = tpu.matmul %29, %28, %cst_23 {dimension_numbers = #tpu.dot_dimension_numbers<[1], [0], [0], [1], [0, 0, 1, 1], [], []>} : vector<8x128xbf16>, vector<128x64xbf16>, vector<8x64xf32> -> vector<8x64xf32>
    %c0_24 = arith.constant 0 : index
    %c0_25 = arith.constant 0 : index
    %31 = vector.load %arg10[%c0_24, %c0_25] : memref<1x64xf32, #tpu.memory_space<vmem>>, vector<1x64xf32>
    %32 = vector.broadcast %31 : vector<1x64xf32> to vector<8x64xf32>
    %33 = arith.addf %30, %32 : vector<8x64xf32>
    %cst_26 = arith.constant 0.000000e+00 : f32
    %34 = vector.broadcast %cst_26 : f32 to vector<8x64xf32>
    %35 = arith.maximumf %33, %34 : vector<8x64xf32>
    %c0_27 = arith.constant 0 : index
    %c0_28 = arith.constant 0 : index
    %36 = vector.load %arg11[%c0_27, %c0_28] : memref<64x32xbf16, #tpu.memory_space<vmem>>, vector<64x32xbf16>
    %37 = arith.truncf %35 : vector<8x64xf32> to vector<8x64xbf16>
    %cst_29 = arith.constant dense<0.000000e+00> : vector<8x32xf32>
    %38 = tpu.matmul %37, %36, %cst_29 {dimension_numbers = #tpu.dot_dimension_numbers<[1], [0], [0], [1], [0, 0, 1, 1], [], []>} : vector<8x64xbf16>, vector<64x32xbf16>, vector<8x32xf32> -> vector<8x32xf32>
    %c0_30 = arith.constant 0 : index
    %c0_31 = arith.constant 0 : index
    %39 = vector.load %arg12[%c0_30, %c0_31] : memref<1x32xf32, #tpu.memory_space<vmem>>, vector<1x32xf32>
    %40 = vector.broadcast %39 : vector<1x32xf32> to vector<8x32xf32>
    %41 = arith.addf %38, %40 : vector<8x32xf32>
    %cst_32 = arith.constant 0.000000e+00 : f32
    %42 = vector.broadcast %cst_32 : f32 to vector<8x32xf32>
    %43 = arith.maximumf %41, %42 : vector<8x32xf32>
    %c0_33 = arith.constant 0 : index
    %c0_34 = arith.constant 0 : index
    %44 = vector.load %arg13[%c0_33, %c0_34] : memref<32x128xbf16, #tpu.memory_space<vmem>>, vector<32x128xbf16>
    %45 = arith.truncf %43 : vector<8x32xf32> to vector<8x32xbf16>
    %cst_35 = arith.constant dense<0.000000e+00> : vector<8x128xf32>
    %46 = tpu.matmul %45, %44, %cst_35 {dimension_numbers = #tpu.dot_dimension_numbers<[1], [0], [0], [1], [0, 0, 1, 1], [], []>} : vector<8x32xbf16>, vector<32x128xbf16>, vector<8x128xf32> -> vector<8x128xf32>
    %c0_36 = arith.constant 0 : index
    %c0_37 = arith.constant 0 : index
    %47 = vector.load %arg14[%c0_36, %c0_37] : memref<1x128xf32, #tpu.memory_space<vmem>>, vector<1x128xf32>
    %48 = vector.broadcast %47 : vector<1x128xf32> to vector<8x128xf32>
    %49 = arith.addf %46, %48 : vector<8x128xf32>
    %c0_38 = arith.constant 0 : index
    %c0_39 = arith.constant 0 : index
    %50 = vector.load %arg15[%c0_38, %c0_39] : memref<8x128xf32, #tpu.memory_space<vmem>>, vector<8x128xf32>
    tpu.vector_store %arg15[%c0_38, %c0_39], %49 {strides = array<i32>} : memref<8x128xf32, #tpu.memory_space<vmem>>, vector<8x128xf32>,
    return
  }
  func.func @transform_0(%arg0: i32) -> (i32, i32) {
    %c0_i32 = arith.constant 0 : i32
    %c0_i32_0 = arith.constant 0 : i32
    return %arg0, %c0_i32 : i32, i32
  }
  func.func @transform_1(%arg0: i32) -> (i32, i32) {
    %c0_i32 = arith.constant 0 : i32
    %c0_i32_0 = arith.constant 0 : i32
    %c0_i32_1 = arith.constant 0 : i32
    return %c0_i32, %c0_i32_0 : i32, i32
  }
  func.func @transform_2(%arg0: i32) -> (i32, i32) {
    %c0_i32 = arith.constant 0 : i32
    %c0_i32_0 = arith.constant 0 : i32
    %c0_i32_1 = arith.constant 0 : i32
    return %c0_i32, %c0_i32_0 : i32, i32
  }
  func.func @transform_3(%arg0: i32) -> (i32, i32) {
    %c0_i32 = arith.constant 0 : i32
    %c0_i32_0 = arith.constant 0 : i32
    %c0_i32_1 = arith.constant 0 : i32
    return %c0_i32, %c0_i32_0 : i32, i32
  }
  func.func @transform_4(%arg0: i32) -> (i32, i32) {
    %c0_i32 = arith.constant 0 : i32
    %c0_i32_0 = arith.constant 0 : i32
    %c0_i32_1 = arith.constant 0 : i32
    return %c0_i32, %c0_i32_0 : i32, i32
  }
  func.func @transform_5(%arg0: i32) -> (i32, i32) {
    %c0_i32 = arith.constant 0 : i32
    %c0_i32_0 = arith.constant 0 : i32
    %c0_i32_1 = arith.constant 0 : i32
    return %c0_i32, %c0_i32_0 : i32, i32
  }
  func.func @transform_6(%arg0: i32) -> (i32, i32) {
    %c0_i32 = arith.constant 0 : i32
    %c0_i32_0 = arith.constant 0 : i32
    %c0_i32_1 = arith.constant 0 : i32
    return %c0_i32, %c0_i32_0 : i32, i32
  }
  func.func @transform_7(%arg0: i32) -> (i32, i32) {
    %c0_i32 = arith.constant 0 : i32
    %c0_i32_0 = arith.constant 0 : i32
    %c0_i32_1 = arith.constant 0 : i32
    return %c0_i32, %c0_i32_0 : i32, i32
  }
  func.func @transform_8(%arg0: i32) -> (i32, i32) {
    %c0_i32 = arith.constant 0 : i32
    %c0_i32_0 = arith.constant 0 : i32
    %c0_i32_1 = arith.constant 0 : i32
    return %c0_i32, %c0_i32_0 : i32, i32
  }
  func.func @transform_9(%arg0: i32) -> (i32, i32) {
    %c0_i32 = arith.constant 0 : i32
    %c0_i32_0 = arith.constant 0 : i32
    %c0_i32_1 = arith.constant 0 : i32
    return %c0_i32, %c0_i32_0 : i32, i32
  }
  func.func @transform_10(%arg0: i32) -> (i32, i32) {
    %c0_i32 = arith.constant 0 : i32
    %c0_i32_0 = arith.constant 0 : i32
    %c0_i32_1 = arith.constant 0 : i32
    return %c0_i32, %c0_i32_0 : i32, i32
  }
  func.func @transform_11(%arg0: i32) -> (i32, i32) {
    %c0_i32 = arith.constant 0 : i32
    %c0_i32_0 = arith.constant 0 : i32
    %c0_i32_1 = arith.constant 0 : i32
    return %c0_i32, %c0_i32_0 : i32, i32
  }
  func.func @transform_12(%arg0: i32) -> (i32, i32) {
    %c0_i32 = arith.constant 0 : i32
    %c0_i32_0 = arith.constant 0 : i32
    %c0_i32_1 = arith.constant 0 : i32
    return %c0_i32, %c0_i32_0 : i32, i32
  }
  func.func @transform_13(%arg0: i32) -> (i32, i32) {
    %c0_i32 = arith.constant 0 : i32
    %c0_i32_0 = arith.constant 0 : i32
    %c0_i32_1 = arith.constant 0 : i32
    return %c0_i32, %c0_i32_0 : i32, i32
  }
  func.func @transform_14(%arg0: i32) -> (i32, i32) {
    %c0_i32 = arith.constant 0 : i32
    %c0_i32_0 = arith.constant 0 : i32
    return %arg0, %c0_i32 : i32, i32
  }
}

</mosaic_0001>

<bundles_post_ra>
// kernel: tpu_custom_call.1
= control target key start
LH: loop header
LB: loop body
LE: loop exit
PB: predicated region body
PF: predicated region fallthrough
CT: control target
= control target key end

     0   :  { %19 = vsyncpa [#allocation3], 0  ;;  %s1464_s0 = inlined_call_operand.hbm [shape: bf16[8,20], index: 0, kind: input, shape index: {}]   ;;  %s1465_s1 = inlined_call_operand.hbm [shape: bf16[20,96], index: 1, kind: input, shape index: {}]   ;;  %s1466_s2 = inlined_call_operand.vmem [shape: f32[1,96], index: 2, kind: input, shape index: {}]   ;;  %s1467_s3 = inlined_call_operand.vmem [shape: bf16[96,128], index: 3, kind: input, shape index: {}]   ;;  %s1468_s4 = inlined_call_operand.vmem [shape: f32[1,128], index: 4, kind: input, shape index: {}]   ;;  %s1469_s5 = inlined_call_operand.vmem [shape: bf16[128,128], index: 5, kind: input, shape index: {}]   ;;  %s1470_s6 = inlined_call_operand.vmem [shape: bf16[96,128], index: 6, kind: input, shape index: {}]   ;;  %s1471_s7 = inlined_call_operand.hbm [shape: f32[1,128], index: 7, kind: input, shape index: {}]   ;;  %s1472_s8 = inlined_call_operand.vmem [shape: bf16[128,64], index: 8, kind: input, shape index: {}]   ;;  %s1473_s9 = inlined_call_operand.hbm [shape: f32[1,64], index: 9, kind: input, shape index: {}]   ;;  %s1474_s10 = inlined_call_operand.vmem [shape: bf16[64,32], index: 10, kind: input, shape index: {}]   ;;  %s1475_s11 = inlined_call_operand.vmem [shape: f32[1,32], index: 11, kind: input, shape index: {}]   ;;  %s1476_s12 = inlined_call_operand.hbm [shape: bf16[32,128], index: 12, kind: input, shape index: {}]   ;;  %s1477_s13 = inlined_call_operand.vmem [shape: f32[1,128], index: 13, kind: input, shape index: {}]   ;;  %s1478_s14 = inlined_call_operand.hbm [shape: f32[8,128], index: 14, kind: output, shape index: {}]  }
   0x1   :  { %20 = vsyncpa [#allocation6], 0 }
   0x2   :  { %21 = vsyncpa [#allocation9], 0 }
   0x3   :  { %22 = vsyncpa [#allocation4], 0  ;;  %s1143_s29 = smov [#allocation5]   ;;  %s1003_s17 = scalar_lea.hbm %s1465_s1, 192 }
   0x4   :  { %s38_s30 = sshll.u32 %s1143_s29, 4  ;;  %p1004_p0 = scmp.ne.s32.totalorder %s1465_s1, %s1003_s17  ;;  %s39_s30 = int_to_ptr.vmem [resolvable:$true] %s38_s30 }
   0x5   :  { %p1007_p1 = scmp.lt.u32.totalorder %s1003_s17, %s1465_s1 }
   0x7   :  { %p1009_p2 = pnand %p1007_p1, %p1004_p0 }
   0x9   :  { %1012 = shalt.err (!%p1009_p2)
}
   0xa   :  { %s1013_s22 = scalar_lea.vmem %s39_s30, 192  ;;  %p1018_p4 = scmp.lt.s32.totalorder %s39_s30, %s39_s30 }
   0xb   :  { %p1014_p3 = scmp.ne.s32.totalorder %s39_s30, %s1013_s22  ;;  %p1019_p5 = scmp.lt.s32.totalorder %s1013_s22, %s1013_s22 }
   0xd   :  { %p1020_p6 = por %p1019_p5, %p1018_p4 }
   0xf   :  { %p1021_p7 = pnand %p1020_p6, %p1014_p3 }
  0x11   :  { %1024 = shalt.err (!%p1021_p7)
}
  0x12   :  { %s1144_s23 = smov 64   ;;  %s1145_s24 = smov 4  }
  0x13   :  { %44 = dma.hbm_to_vmem [thread:$0]  %s1465_s1, 192, %s39_s30, [#allocation6], %s1144_s23, %s1144_s23, %s1145_s24  }
  0x14   :  { %s1146_s27 = smov [#allocation8]   ;;  %s1147_s29 = smov [#allocation2]  }
  0x15   :  { %s73_s28 = sshll.u32 %s1146_s27, 4  ;;  %s29_s15 = sshll.u32 %s1147_s29, 4  ;;  %s74_s28 = int_to_ptr.vmem [resolvable:$true] %s73_s28  ;;  %s30_s15 = int_to_ptr.vmem [resolvable:$true] %s29_s15 }
  0x16   :  { %s1025_s18 = scalar_lea.hbm %s1473_s9, 16 }
  0x17   :  { %p1026_p8 = scmp.ne.s32.totalorder %s1473_s9, %s1025_s18  ;;  %p1029_p9 = scmp.lt.u32.totalorder %s1025_s18, %s1473_s9 }
  0x19   :  { %p1031_p10 = pnand %p1029_p9, %p1026_p8 }
  0x1b   :  { %1034 = shalt.err (!%p1031_p10)
}
  0x1c   :  { %s1035_s1 = scalar_lea.vmem %s74_s28, 16  ;;  %s1039_s30 = scalar_lea.vmem %s74_s28, 32 }
  0x1d   :  { %p1036_p11 = scmp.ne.s32.totalorder %s74_s28, %s1035_s1  ;;  %p1040_p12 = scmp.lt.s32.totalorder %s74_s28, %s74_s28 }
  0x1e   :  { %p1041_p13 = scmp.lt.s32.totalorder %s1039_s30, %s1035_s1 }
  0x20   :  { %p1042_p0 = por %p1041_p13, %p1040_p12 }
  0x22   :  { %p1043_p1 = pnand %p1042_p0, %p1036_p11 }
  0x24   :  { %1046 = shalt.err (!%p1043_p1)
}
  0x25   :  { %76 = dma.hbm_to_vmem [thread:$0]  %s1473_s9, 16, %s74_s28, [#allocation9]  }
  0x26   :  { %s1047_s16 = scalar_lea.hbm %s1464_s0, 64 }
  0x27   :  { %p1048_p2 = scmp.ne.s32.totalorder %s1464_s0, %s1047_s16  ;;  %p1051_p3 = scmp.lt.u32.totalorder %s1047_s16, %s1464_s0 }
  0x29   :  { %p1053_p4 = pnand %p1051_p3, %p1048_p2 }
  0x2b   :  { %1056 = shalt.err (!%p1053_p4)
}
  0x2c   :  { %s1057_s21 = scalar_lea.vmem %s30_s15, 64  ;;  %p1062_p6 = scmp.lt.s32.totalorder %s30_s15, %s30_s15 }
  0x2d   :  { %p1058_p5 = scmp.ne.s32.totalorder %s30_s15, %s1057_s21  ;;  %p1063_p7 = scmp.lt.s32.totalorder %s1057_s21, %s1057_s21 }
  0x2f   :  { %p1064_p8 = por %p1063_p7, %p1062_p6 }
  0x31   :  { %p1065_p9 = pnand %p1064_p8, %p1058_p5 }
  0x33   :  { %1068 = shalt.err (!%p1065_p9)
}
  0x34   :  { %32 = dma.hbm_to_vmem [thread:$0]  %s1464_s0, 64, %s30_s15, [#allocation3]  }
  0x35   :  { %s1148_s22 = smov [#allocation7]   ;;  %s1149_s30 = smov [#allocation10]  }
  0x36   :  { %s61_s1 = sshll.u32 %s1148_s22, 4  ;;  %s86_s25 = sshll.u32 %s1149_s30, 4  ;;  %s62_s1 = int_to_ptr.vmem [resolvable:$true] %s61_s1  ;;  %s87_s25 = int_to_ptr.vmem [resolvable:$true] %s86_s25 }
  0x37   :  { %s1069_s29 = scalar_lea.hbm %s1471_s7, 16 }
  0x38   :  { %p1070_p10 = scmp.ne.s32.totalorder %s1471_s7, %s1069_s29  ;;  %p1073_p11 = scmp.lt.u32.totalorder %s1069_s29, %s1471_s7 }
  0x3a   :  { %p1075_p12 = pnand %p1073_p11, %p1070_p10 }
  0x3c   :  { %1078 = shalt.err (!%p1075_p12)
}
  0x3d   :  { %s1079_s0 = scalar_lea.vmem %s62_s1, 16  ;;  %s1083_s15 = scalar_lea.vmem %s62_s1, 32 }
  0x3e   :  { %p1080_p13 = scmp.ne.s32.totalorder %s62_s1, %s1079_s0  ;;  %p1084_p0 = scmp.lt.s32.totalorder %s62_s1, %s62_s1 }
  0x3f   :  { %p1085_p1 = scmp.lt.s32.totalorder %s1083_s15, %s1079_s0 }
  0x41   :  { %p1086_p2 = por %p1085_p1, %p1084_p0 }
  0x43   :  { %p1087_p3 = pnand %p1086_p2, %p1080_p13 }
  0x45   :  { %1090 = shalt.err (!%p1087_p3)
}
  0x46   :  { %64 = dma.hbm_to_vmem [thread:$0]  %s1471_s7, 16, %s62_s1, [#allocation6]  }
  0x47   :  { %s1091_s22 = scalar_lea.hbm %s1476_s12, 256 }
  0x48   :  { %p1092_p4 = scmp.ne.s32.totalorder %s1476_s12, %s1091_s22  ;;  %p1095_p5 = scmp.lt.u32.totalorder %s1091_s22, %s1476_s12 }
  0x4a   :  { %p1097_p6 = pnand %p1095_p5, %p1092_p4 }
  0x4c   :  { %1100 = shalt.err (!%p1097_p6)
}
  0x4d   :  { %s1101_s16 = scalar_lea.vmem %s87_s25, 256  ;;  %p1106_p8 = scmp.lt.s32.totalorder %s87_s25, %s87_s25 }
  0x4e   :  { %p1102_p7 = scmp.ne.s32.totalorder %s87_s25, %s1101_s16  ;;  %p1107_p9 = scmp.lt.s32.totalorder %s1101_s16, %s1101_s16 }
  0x50   :  { %p1108_p10 = por %p1107_p9, %p1106_p8 }
  0x52   :  { %p1109_p11 = pnand %p1108_p10, %p1102_p7 }
  0x54   :  { %1112 = shalt.err (!%p1109_p11)
}
  0x55   :  { %92 = dma.hbm_to_vmem [thread:$0]  %s1476_s12, 256, %s87_s25, [#allocation9], %s1144_s23, %s1144_s23, %s1145_s24  }
  0x56   :  { %1135 = dma.done.wait [#allocation3], 64  }
  0x57   :  { %1136 = vsyncadd [#allocation3], 4294967232 }
  0x58   :  { %1137 = dma.done.wait [#allocation6], 208  }
  0x59   :  { %1138 = vsyncadd [#allocation6], 4294967088 }
  0x5a   :  { %1139 = dma.done.wait [#allocation9], 272  }
  0x5b   :  { %1140 = vsyncadd [#allocation9], 4294967024  ;;  %v1150_v0 = vmov 0.0   ;;  %vm1151_vm0 = vmmov 0   ;;  %v967_v1 = vld [vmem:[#allocation5] sm:$0xff]   ;;  %vm135_vm1 = vcmask 1041408  }
  0x5c   :  { %857 = vmatprep.subr.bf16.mxu0 %v1150_v0  ;;  %861 = vmatprep.mubr.msk.bf16.mxu0 %vm1151_vm0, %v1150_v0  ;;  %v968_v2 = vld [vmem:[#allocation5 + $0x8] ss:$0 sps:$4 sm:$0x33]   ;;  %v969_v3 = vld [vmem:[%s1467_s3] sm:$0xff]   ;;  %vm131_vm2 = vcmask 162816   ;;  %v973_v8 = vld [vmem:[%s1467_s3 + $0x10] sm:$0xff]  }
  0x5d   :  { %865 = vmatprep.subr.bf16.mxu1 %v1150_v0  ;;  %877 = vmatprep.mubr.msk.bf16.mxu1 %vm1151_vm0, %v1150_v0  ;;  %v137_v4 = vsel %vm135_vm1, %v968_v2, 0  ;;  %v971_v5 = vld [vmem:[%s1467_s3 + $0x8] sm:$0xff]   ;;  %v111_v6 = vld [vmem:[#allocation2] sm:$0xf]  ;;  %v975_v10 = vld [vmem:[%s1467_s3 + $0x18] sm:$0xff]   ;;  %vm236_vm3 = vcmask 785408  }
  0x5e   :  { %858 = vmatpush3.bf16.msra.mxu0 %v967_v1  ;;  %866 = vmatpush3.bf16.msra.mxu1 %v969_v3  ;;  %v970_v7 = vld [vmem:[%s1470_s6] sm:$0xff]   ;;  %v972_v9 = vld [vmem:[%s1470_s6 + $0x8] sm:$0xff]   ;;  %v974_v11 = vld [vmem:[%s1470_s6 + $0x10] sm:$0xff]   ;;  %vm636_vm4 = vcmask 523264   ;;  %vm705_vm5 = vcmask 261120   ;;  %s1152_s1 = smov [#allocation11]  }
  0x5f   :  { %859 = vmatprep.subr.bf16.mxu0 %v1150_v0  ;;  %867 = vmatprep.subr.bf16.mxu1 %v1150_v0  ;;  %v976_v12 = vld [vmem:[%s1470_s6 + $0x18] sm:$0xff]   ;;  %v977_v13 = vld [vmem:[%s1467_s3 + $0x20] sm:$0xff]   ;;  %v979_v15 = vld [vmem:[%s1467_s3 + $0x28] sm:$0xff]   ;;  %s756_s12 = sshll.u32 %s1152_s1, 4  ;;  %s757_s12 = int_to_ptr.vmem [resolvable:$true] %s756_s12 }
  0x60   :  { %v978_v14 = vld [vmem:[%s1470_s6 + $0x20] sm:$0xff]   ;;  %v980_v16 = vld [vmem:[%s1470_s6 + $0x28] sm:$0xff]   ;;  %v983_v27 = vld [vmem:[%s1469_s5 + $0x10] sm:$0xff]   ;;  %p1118_p13 = scmp.lt.s32.totalorder %s757_s12, %s757_s12 }
  0x61   :  { %v767_v17 = vld [vmem:[%s1466_s2] ss:$0 sm:$0xff]  ;;  %v982_v26 = vld [vmem:[%s1469_s5 + $0x8] sm:$0xff]   ;;  %v984_v28 = vld [vmem:[%s1469_s5 + $0x18] sm:$0xff]  }
  0x62   :  { %860 = vmatpush3.bf16.msra.mxu0 %v137_v4  ;;  %868 = vmatpush3.bf16.msra.mxu1 %v971_v5  ;;  %v981_v24 = vld [vmem:[%s1469_s5] sm:$0xff]   ;;  %v986_v30 = vld [vmem:[%s1469_s5 + $0x28] sm:$0xff]   ;;  %v987_v31 = vld [vmem:[%s1469_s5 + $0x30] sm:$0xff]  }
  0x63   :  { %881 = vmatprep.subr.bf16.mxu0 %v1150_v0  ;;  %869 = vmatprep.subr.bf16.mxu1 %v1150_v0  ;;  %v985_v29 = vld [vmem:[%s1469_s5 + $0x20] sm:$0xff]   ;;  %v988_v32 = vld [vmem:[%s1469_s5 + $0x38] sm:$0xff]   ;;  %v990_v34 = vld [vmem:[%s1472_s8 + $0x8] sm:$0xff]  }
  0x64   :  { %v989_v33 = vld [vmem:[%s1472_s8] sm:$0xff]   ;;  %v991_v35 = vld [vmem:[%s1472_s8 + $0x10] sm:$0xff]   ;;  %v992_v36 = vld [vmem:[%s1472_s8 + $0x18] sm:$0xff]  }
  0x65   :  { %862 = vmatmul.mubr.msk.bf16.vlgmr.msra.gmra.mrb[0].mxu0 %vm131_vm2, %v111_v6  ;;  %v993_v37 = vld [vmem:[%s1472_s8 + $0x20] sm:$0xff]   ;;  %v994_v38 = vld [vmem:[%s1472_s8 + $0x28] sm:$0xff]   ;;  %v995_v51 = vld [vmem:[%s1472_s8 + $0x30] sm:$0xff]  }
  0x66   :  { %882 = vmatpush3.bf16.msra.mxu0 %v970_v7  ;;  %893 = vmatprep.mubr.msk.bf16.mxu0 %vm1151_vm0, %v1150_v0  ;;  %v771_v39 = vld [vmem:[%s1468_s4] ss:$0 sm:$0xff]  ;;  %v996_v52 = vld [vmem:[%s1472_s8 + $0x38] sm:$0xff]   ;;  %v998_v54 = vld [vmem:[%s1474_s10 + $0x8] sm:$0xff]  }
  0x67   :  { %883 = vmatprep.subr.bf16.mxu0 %v1150_v0  ;;  %870 = vmatpush3.bf16.msra.mxu1 %v973_v8  ;;  %v997_v53 = vld [vmem:[%s1474_s10] sm:$0xff]   ;;  %v794_v56 = vld [vmem:[#allocation7] ss:$0 sm:$0xff]  ;;  %v1000_v2 = vld [vmem:[%s1474_s10 + $0x18] sm:$0xff]  }
  0x68   :  { %871 = vmatprep.subr.bf16.mxu1 %v1150_v0  ;;  %v999_v1 = vld [vmem:[%s1474_s10 + $0x10] sm:$0xff]  }
  0x69   :  { %v1001_v3 = vld [vmem:[#allocation10] sm:$0xff]   ;;  %v795_v4 = vld [vmem:[#allocation8] ss:$0 sm:$0xff] }
  0x6a   :  { %884 = vmatpush3.bf16.msra.mxu0 %v972_v9 }
  0x6b   :  { %885 = vmatprep.subr.bf16.mxu0 %v1150_v0  ;;  %872 = vmatpush3.bf16.msra.mxu1 %v975_v10 }
  0x6c   :  { %873 = vmatprep.subr.bf16.mxu1 %v1150_v0 }
  0x6e   :  { %886 = vmatpush3.bf16.msra.mxu0 %v974_v11 }
  0x6f   :  { %887 = vmatprep.subr.bf16.mxu0 %v1150_v0  ;;  %874 = vmatpush3.bf16.msra.mxu1 %v977_v13  ;;  %v804_v13 = vld [vmem:[%s1475_s11] ss:$0 sm:$0xff]  ;;  %s1113_s11 = scalar_lea.vmem %s757_s12, 128 }
  0x70   :  { %875 = vmatprep.subr.bf16.mxu1 %v1150_v0  ;;  %p1114_p12 = scmp.ne.s32.totalorder %s757_s12, %s1113_s11  ;;  %p1119_p0 = scmp.lt.s32.totalorder %s1113_s11, %s1113_s11 }
  0x72   :  { %888 = vmatpush3.bf16.msra.mxu0 %v976_v12  ;;  %v1002_v12 = vld [vmem:[#allocation10 + $0x8] sm:$0xff]   ;;  %p1120_p1 = por %p1119_p0, %p1118_p13 }
  0x73   :  { %889 = vmatprep.subr.bf16.mxu0 %v1150_v0  ;;  %876 = vmatpush3.bf16.msra.mxu1 %v979_v15 }
  0x74   :  { %897 = vmatprep.subr.bf16.mxu1 %v1150_v0  ;;  %p1121_p2 = pnand %p1120_p1, %p1114_p12 }
  0x76   :  { %890 = vmatpush3.bf16.msra.mxu0 %v978_v14 }
  0x77   :  { %891 = vmatprep.subr.bf16.mxu0 %v1150_v0 }
  0x7a   :  { %892 = vmatpush3.bf16.msra.mxu0 %v980_v16 }
  0x7b   :  { %917 = vmatprep.subr.bf16.mxu0 %v1150_v0 }
 0x138   :  { %v173_v18 = vpop.f32.mrb[0].mxu0 }
 0x139   :  { %v174_v19 = vadd.f32 %v767_v17, %v173_v18  ;;  %v863_v20 = vpop.f32.mrb[1].mxu0 }
 0x13a   :  { %v176_v21 = vpop.f32.mrb[2].mxu0  ;;  %v810_v20 = vld [vmem:[%s1477_s13] ss:$0 sm:$0xff] }
 0x13b   :  { %v179_v22 = vmax.f32 %v174_v19, 0.0  ;;  %v864_v23 = vpop.f32.mrb[3].mxu0 }
 0x13d   :  { %v192_v25 = vpack.c.bf16 %v179_v22, %v179_v22 }
 0x13f   :  { %878 = vmatmul.mubr.msk.bf16.vlgmr.msra.gmra.mrb[0].mxu1 %vm236_vm3, %v192_v25  ;;  %894 = vmatmul.mubr.msk.bf16.vlgmr.msra.gmra.mrb[4].mxu0 %vm236_vm3, %v192_v25 }
 0x140   :  { %898 = vmatpush3.bf16.msra.mxu1 %v981_v24  ;;  %913 = vmatprep.mubr.msk.bf16.mxu1 %vm1151_vm0, %v1150_v0 }
 0x141   :  { %899 = vmatprep.subr.bf16.mxu1 %v1150_v0  ;;  %933 = vmatprep.mubr.msk.bf16.mxu0 %vm1151_vm0, %v1150_v0 }
 0x142   :  { %918 = vmatpush3.bf16.msra.mxu0 %v989_v33 }
 0x143   :  { %919 = vmatprep.subr.bf16.mxu0 %v1150_v0 }
 0x144   :  { %900 = vmatpush3.bf16.msra.mxu1 %v982_v26 }
 0x145   :  { %901 = vmatprep.subr.bf16.mxu1 %v1150_v0 }
 0x146   :  { %920 = vmatpush3.bf16.msra.mxu0 %v990_v34 }
 0x147   :  { %921 = vmatprep.subr.bf16.mxu0 %v1150_v0 }
 0x148   :  { %902 = vmatpush3.bf16.msra.mxu1 %v983_v27 }
 0x149   :  { %903 = vmatprep.subr.bf16.mxu1 %v1150_v0 }
 0x14a   :  { %922 = vmatpush3.bf16.msra.mxu0 %v991_v35 }
 0x14b   :  { %923 = vmatprep.subr.bf16.mxu0 %v1150_v0 }
 0x14c   :  { %904 = vmatpush3.bf16.msra.mxu1 %v984_v28 }
 0x14d   :  { %905 = vmatprep.subr.bf16.mxu1 %v1150_v0 }
 0x14e   :  { %924 = vmatpush3.bf16.msra.mxu0 %v992_v36 }
 0x14f   :  { %925 = vmatprep.subr.bf16.mxu0 %v1150_v0 }
 0x150   :  { %906 = vmatpush3.bf16.msra.mxu1 %v985_v29 }
 0x151   :  { %907 = vmatprep.subr.bf16.mxu1 %v1150_v0 }
 0x152   :  { %926 = vmatpush3.bf16.msra.mxu0 %v993_v37 }
 0x153   :  { %927 = vmatprep.subr.bf16.mxu0 %v1150_v0 }
 0x154   :  { %908 = vmatpush3.bf16.msra.mxu1 %v986_v30 }
 0x155   :  { %909 = vmatprep.subr.bf16.mxu1 %v1150_v0 }
 0x156   :  { %928 = vmatpush3.bf16.msra.mxu0 %v994_v38 }
 0x157   :  { %929 = vmatprep.subr.bf16.mxu0 %v1150_v0 }
 0x158   :  { %910 = vmatpush3.bf16.msra.mxu1 %v987_v31 }
 0x159   :  { %911 = vmatprep.subr.bf16.mxu1 %v1150_v0 }
 0x15a   :  { %930 = vmatpush3.bf16.msra.mxu0 %v995_v51 }
 0x15b   :  { %931 = vmatprep.subr.bf16.mxu0 %v1150_v0 }
 0x15c   :  { %912 = vmatpush3.bf16.msra.mxu1 %v988_v32 }
 0x15d   :  { %937 = vmatprep.subr.bf16.mxu1 %v1150_v0 }
 0x15e   :  { %932 = vmatpush3.bf16.msra.mxu0 %v996_v52 }
 0x15f   :  { %949 = vmatprep.subr.bf16.mxu0 %v1150_v0 }
 0x212   :  { %v274_v40 = vpop.f32.mrb[0].mxu1  ;;  %v380_v41 = vpop.f32.mrb[4].mxu0 }
 0x213   :  { %v275_v42 = vadd.f32 %v771_v39, %v274_v40  ;;  %v879_v43 = vpop.f32.mrb[1].mxu1  ;;  %v895_v44 = vpop.f32.mrb[5].mxu0 }
 0x214   :  { %v277_v45 = vpop.f32.mrb[2].mxu1  ;;  %v383_v46 = vpop.f32.mrb[6].mxu0 }
 0x215   :  { %v280_v47 = vmax.f32 %v275_v42, 0.0  ;;  %v880_v48 = vpop.f32.mrb[3].mxu1  ;;  %v896_v49 = vpop.f32.mrb[7].mxu0 }
 0x217   :  { %v309_v50 = vpack.c.bf16 %v280_v47, %v280_v47 }
 0x219   :  { %914 = vmatmul.mubr.bf16.vlgmr.msra.gmra.mrb[4].mxu1 %v309_v50 }
 0x21a   :  { %945 = vmatprep.mubr.msk.bf16.mxu1 %vm1151_vm0, %v1150_v0  ;;  %938 = vmatpush3.bf16.msra.mxu1 %v997_v53 }
 0x21b   :  { %939 = vmatprep.subr.bf16.mxu1 %v1150_v0 }
 0x21e   :  { %940 = vmatpush3.bf16.msra.mxu1 %v998_v54 }
 0x21f   :  { %941 = vmatprep.subr.bf16.mxu1 %v1150_v0 }
 0x222   :  { %942 = vmatpush3.bf16.msra.mxu1 %v999_v1 }
 0x223   :  { %943 = vmatprep.subr.bf16.mxu1 %v1150_v0 }
 0x226   :  { %944 = vmatpush3.bf16.msra.mxu1 %v1000_v2 }
 0x2ec   :  { %v468_v55 = vpop.f32.mrb[4].mxu1 }
 0x2ed   :  { %v469_v57 = vadd.f32 %v468_v55, %v380_v41  ;;  %v915_v58 = vpop.f32.mrb[5].mxu1 }
 0x2ee   :  { %v471_v59 = vpop.f32.mrb[6].mxu1 }
 0x2ef   :  { %v481_v60 = vadd.f32 %v794_v56, %v469_v57  ;;  %v916_v61 = vpop.f32.mrb[7].mxu1 }
 0x2f1   :  { %v482_v62 = vmax.f32 %v481_v60, 0.0 }
 0x2f3   :  { %v499_v63 = vpack.c.bf16 %v482_v62, %v482_v62 }
 0x2f5   :  { %934 = vmatmul.mubr.bf16.vlgmr.msra.gmra.mrb[8].mxu0 %v499_v63 }
 0x2f6   :  { %953 = vmatprep.mubr.msk.bf16.mxu0 %vm1151_vm0, %v1150_v0  ;;  %950 = vmatpush3.bf16.msra.mxu0 %v1001_v3 }
 0x2f7   :  { %951 = vmatprep.subr.bf16.mxu0 %v1150_v0 }
 0x2fa   :  { %952 = vmatpush3.bf16.msra.mxu0 %v1002_v12 }
 0x3c8   :  { %v589_v5 = vpop.f32.mrb[8].mxu0 }
 0x3c9   :  { %v590_v6 = vadd.f32 %v795_v4, %v589_v5  ;;  %v935_v7 = vpop.f32.mrb[9].mxu0 }
 0x3ca   :  { %v592_v8 = vpop.f32.mrb[10].mxu0 }
 0x3cb   :  { %v595_v9 = vmax.f32 %v590_v6, 0.0  ;;  %v936_v10 = vpop.f32.mrb[11].mxu0 }
 0x3cd   :  { %v604_v11 = vpack.c.bf16 %v595_v9, %v595_v9 }
 0x3cf   :  { %946 = vmatmul.mubr.msk.bf16.vlgmr.msra.gmra.mrb[8].mxu1 %vm636_vm4, %v604_v11 }
 0x4a2   :  { %v674_v14 = vpop.f32.mrb[8].mxu1 }
 0x4a3   :  { %v675_v15 = vadd.f32 %v804_v13, %v674_v14  ;;  %v947_v16 = vpop.f32.mrb[9].mxu1 }
 0x4a4   :  { %v677_v0 = vpop.f32.mrb[10].mxu1 }
 0x4a5   :  { %v680_v17 = vmax.f32 %v675_v15, 0.0  ;;  %v948_v18 = vpop.f32.mrb[11].mxu1 }
 0x4a7   :  { %v685_v19 = vpack.c.bf16 %v680_v17, %v680_v17 }
 0x4a9   :  { %954 = vmatmul.mubr.msk.bf16.vlgmr.msra.gmra.mrb[12].mxu0 %vm705_vm5, %v685_v19 }
 0x57c   :  { %v743_v21 = vpop.f32.mrb[12].mxu0 }
 0x57d   :  { %v744_v22 = vadd.f32 %v810_v20, %v743_v21  ;;  %v955_v23 = vpop.f32.mrb[13].mxu0 }
 0x57e   :  { %v746_v24 = vpop.f32.mrb[14].mxu0 }
 0x57f   :  { %749 = vst [vmem:[#allocation11] sm:$0xff] %v744_v22  ;;  %v956_v25 = vpop.f32.mrb[15].mxu0 }
 0x580   :  { %1124 = shalt.err (!%p1121_p2)
}
 0x581   :  { %s1125_s13 = scalar_lea.hbm %s1478_s14, 128 }
 0x582   :  { %p1126_p3 = scmp.ne.s32.totalorder %s1478_s14, %s1125_s13  ;;  %p1129_p4 = scmp.lt.u32.totalorder %s1125_s13, %s1478_s14 }
 0x584   :  { %p1131_p5 = pnand %p1129_p4, %p1126_p3 }
 0x586   :  { %1134 = shalt.err (!%p1131_p5)
}
 0x587   :  { %759 = dma.vmem_to_hbm [thread:$0]  %s757_s12, 128, %s1478_s14, [#allocation4]  }
 0x588   :  { %1141 = dma.done.wait [#allocation4], 128  }
 0x589   :  { %1142 = vsyncadd [#allocation4], 4294967168 }
 0x58a   :  { %763 = vsyncpa [#allocation3], 1 }
 0x58b   :  { %764 = vsyncpa [#allocation6], 1 }
 0x58c   :  { %765 = vsyncpa [#allocation9], 1 }
 0x58d   :  { %766 = vsyncpa [#allocation4], 1 }

</bundles_post_ra>
